<compile_context>
chip_gen: v7x
topology: tpu7x:2x2x1
jax: 0.10.0
libtpu: 0.0.40
codegen_flags: <defaults>
</compile_context>

<pallas_src>
import jax
import jax.numpy as jnp
from jax.experimental import pallas as pl
from jax.experimental.pallas import tpu as pltpu

_LANES = 128
_SUBLANES = 8
_NEG_PAD = -1e30                      # exp(-1e30) == 0.0 in f32 -> padding is inert
_SINGLE_TILE_MAX_ELEMS = 512 * 1024   # 2 MiB f32 slab per buffer: safe on v5e/v6e/v7x
_TILE_ROWS_DEFAULT = 512              # (512, 128) f32 tile = 256 KiB
_SMALL_N_FAST_PATH = 2048             # below this, plain jnp beats pallas dispatch cost


# ----------------------------- kernels ------------------------------------ #

def _softmax_single_tile_kernel(x_ref, o_ref):
    # x_ref/o_ref: (R, 128) f32 in VMEM -- whole (padded) problem in one tile.
    e = jnp.exp(x_ref[...])                                        # EUP
    s = jnp.sum(jnp.sum(e, axis=1, keepdims=True),                 # XLU lane reduce
                axis=0, keepdims=True)                             # sublane reduce -> (1,1)
    o_ref[...] = e * pl.reciprocal(s)                              # one recip + VPU multiply


def _sum_exp_kernel(x_ref, s_ref):
    # Pass 1 of the tiled path: accumulate sum(exp(x)) into a resident (1,1)
    # output block (same block index every grid step, axis marked "arbitrary").
    @pl.when(pl.program_id(0) == 0)
    def _():
        s_ref[...] = jnp.zeros_like(s_ref)

    e = jnp.exp(x_ref[...])
    s_ref[...] += jnp.sum(jnp.sum(e, axis=1, keepdims=True), axis=0, keepdims=True)


def _scale_kernel(s_ref, x_ref, o_ref):
    # Pass 2 of the tiled path: recompute exp and scale by 1/sum.
    inv = pl.reciprocal(s_ref[...])            # (1,1) reciprocal per step (cheap)
    o_ref[...] = jnp.exp(x_ref[...]) * inv     # broadcast multiply on the VPU


# --------------------------- layout helpers -------------------------------- #

def _ceil_to(a, m):
    return -(-a // m) * m


def _pad_to_slab(x_f32, rows_multiple):
    """Pad the 1-D vector with -1e30 and reshape to a dense (rows, 128) slab."""
    n = x_f32.shape[0]
    rows = _ceil_to(max(-(-n // _LANES), rows_multiple), rows_multiple)
    n_pad = rows * _LANES
    xp = jnp.pad(x_f32, (0, n_pad - n), constant_values=_NEG_PAD)
    return xp.reshape(rows, _LANES), rows


def _x_tile_spec(tile_rows):
    """Input tile spec for pass 2; request 3-deep pipelining when available."""
    idx = lambda i: (i, 0)
    try:
        return pl.BlockSpec((tile_rows, _LANES), idx, pipeline_mode=pl.Buffered(3))
    except (AttributeError, TypeError):
        return pl.BlockSpec((tile_rows, _LANES), idx)


# ------------------------------ wrappers ----------------------------------- #

def _softmax_pallas_single_tile(x_f32):
    n = x_f32.shape[0]
    slab, rows = _pad_to_slab(x_f32, _SUBLANES)
    out = pl.pallas_call(
        _softmax_single_tile_kernel,
        out_shape=jax.ShapeDtypeStruct((rows, _LANES), jnp.float32),
        # Block shape == full array dims, so the (8,128) divisibility rule is
        # trivially satisfied; the whole slab sits in one VMEM tile.
        in_specs=[pl.BlockSpec((rows, _LANES), lambda: (0, 0))],
        out_specs=pl.BlockSpec((rows, _LANES), lambda: (0, 0)),
    )(slab)
    return out.reshape(-1)[:n]


def _softmax_pallas_tiled(x_f32, tile_rows=_TILE_ROWS_DEFAULT):
    n = x_f32.shape[0]
    assert tile_rows % _SUBLANES == 0
    slab, rows = _pad_to_slab(x_f32, tile_rows)
    num_tiles = rows // tile_rows

    # Pass 1: global sum of exp into a (1,1) accumulator (reduction axis).
    s = pl.pallas_call(
        _sum_exp_kernel,
        out_shape=jax.ShapeDtypeStruct((1, 1), jnp.float32),
        grid=(num_tiles,),
        in_specs=[pl.BlockSpec((tile_rows, _LANES), lambda i: (i, 0))],
        out_specs=pl.BlockSpec((1, 1), lambda i: (0, 0)),
        compiler_params=pltpu.CompilerParams(dimension_semantics=("arbitrary",)),
    )(slab)

    # Pass 2: scale (rows are independent -> "parallel"; shards across TCs on v7x).
    out = pl.pallas_call(
        _scale_kernel,
        out_shape=jax.ShapeDtypeStruct((rows, _LANES), jnp.float32),
        grid=(num_tiles,),
        in_specs=[pl.BlockSpec((1, 1), lambda i: (0, 0)),
                  _x_tile_spec(tile_rows)],
        out_specs=pl.BlockSpec((tile_rows, _LANES), lambda i: (i, 0)),
        compiler_params=pltpu.CompilerParams(dimension_semantics=("parallel",)),
    )(s, slab)
    return out.reshape(-1)[:n]


def softmax(data, *, force_pallas=False, tile_rows=_TILE_ROWS_DEFAULT,
            single_tile_max_elems=_SINGLE_TILE_MAX_ELEMS):
    """Pallas equivalent of the PyTorch `Softmax.forward` (1-D input)."""
    x = jnp.asarray(data, dtype=jnp.float32)   # f32 end-to-end (no bf16 EUP on v5e)
    assert x.ndim == 1, "module operates on a 1-D tensor"
    n = x.shape[0]

    if not force_pallas and n < _SMALL_N_FAST_PATH:
        # Tiny inputs: pallas_call dispatch overhead dwarfs the work.
        e = jnp.exp(x)
        return e / jnp.sum(e)

    if n <= single_tile_max_elems:
        return _softmax_pallas_single_tile(x)
    return _softmax_pallas_tiled(x, tile_rows=tile_rows)


# ------------------------------- demo -------------------------------------- #

if __name__ == "__main__":
    key = jax.random.PRNGKey(0)

    # 1) Small example (seq=8) forced through the Pallas single-tile kernel.
    x = jax.random.normal(key, (8,), dtype=jnp.float32)
    out = jax.block_until_ready(softmax(x, force_pallas=True))
    ref = jnp.exp(x) / jnp.sum(jnp.exp(x))
    assert jnp.allclose(out, ref, rtol=1e-5, atol=1e-6)
    assert jnp.allclose(jnp.sum(out), 1.0, rtol=1e-5, atol=1e-6)

    # 2) The module's own example: data = [-1, -2, 3].
    d = jnp.array([-1.0, -2.0, 3.0])
    out2 = jax.block_until_ready(softmax(d, force_pallas=True))
    ref2 = jnp.exp(d) / jnp.sum(jnp.exp(d))
    assert jnp.allclose(out2, ref2, rtol=1e-5, atol=1e-6)

    # 3) Exercise the tiled two-pass path at a small shape
    #    (N=2000 -> padded to (16,128), tile_rows=8 -> grid of 2 steps per pass).
    x3 = jax.random.normal(jax.random.PRNGKey(0), (2000,), dtype=jnp.float32) * 0.1
    out3 = jax.block_until_ready(
        softmax(x3, force_pallas=True, tile_rows=8, single_tile_max_elems=1024))
    ref3 = jnp.exp(x3) / jnp.sum(jnp.exp(x3))
    assert jnp.allclose(out3, ref3, rtol=1e-5, atol=1e-6)
    assert jnp.allclose(jnp.sum(out3), 1.0, rtol=1e-5, atol=1e-6)

    print("KERNEL_OK")
</pallas_src>

<mosaic_0001>
module attributes {stable_mosaic.version = 11 : i64} {
  func.func @_softmax_single_tile_kernel(%arg0: memref<8x128xf32, #tpu.memory_space<vmem>>, %arg1: memref<8x128xf32, #tpu.memory_space<vmem>>) attributes {dimension_semantics = [], scalar_prefetch = 0 : i64, scratch_operands = 0 : i64, tpu.core_type = #tpu.core_type<tc>} {
    %c0 = arith.constant 0 : index
    %c0_0 = arith.constant 0 : index
    %0 = vector.load %arg0[%c0, %c0_0] : memref<8x128xf32, #tpu.memory_space<vmem>>, vector<8x128xf32>
    %1 = math.exp %0 : vector<8x128xf32>
    %cst = arith.constant dense<0.000000e+00> : vector<8xf32>
    %2 = vector.multi_reduction <add>, %1, %cst [1] : vector<8x128xf32> to vector<8xf32>
    %3 = vector.shape_cast %2 : vector<8xf32> to vector<8x1xf32>
    %cst_1 = arith.constant dense<0.000000e+00> : vector<1xf32>
    %4 = vector.multi_reduction <add>, %3, %cst_1 [0] : vector<8x1xf32> to vector<1xf32>
    %5 = vector.shape_cast %4 : vector<1xf32> to vector<1x1xf32>
    %6 = tpu.reciprocal %5 : vector<1x1xf32> -> vector<1x1xf32>
    %7 = vector.broadcast %6 : vector<1x1xf32> to vector<8x128xf32>
    %8 = arith.mulf %1, %7 : vector<8x128xf32>
    %c0_2 = arith.constant 0 : index
    %c0_3 = arith.constant 0 : index
    %9 = vector.load %arg1[%c0_2, %c0_3] : memref<8x128xf32, #tpu.memory_space<vmem>>, vector<8x128xf32>
    tpu.vector_store %arg1[%c0_2, %c0_3], %8 {strides = array<i32>} : memref<8x128xf32, #tpu.memory_space<vmem>>, vector<8x128xf32>,
    return
  }
}

</mosaic_0001>

<bundles_post_ra>
// kernel: tpu_custom_call.1
= control target key start
LH: loop header
LB: loop body
LE: loop exit
PB: predicated region body
PF: predicated region fallthrough
CT: control target
= control target key end

     0   :  { %6 = vsyncpa [#allocation3], 0  ;;  %s140_s0 = inlined_call_operand.hbm [shape: f32[8,128], index: 0, kind: input, shape index: {}]   ;;  %s141_s1 = inlined_call_operand.hbm [shape: f32[8,128], index: 1, kind: output, shape index: {}]  }
   0x1   :  { %7 = vsyncpa [#allocation4], 0  ;;  %s104_s6 = smov [#allocation2]   ;;  %s56_s10 = scalar_lea.hbm %s140_s0, 128 }
   0x2   :  { %s14_s7 = sshll.u32 %s104_s6, 4  ;;  %p57_p0 = scmp.ne.s32.totalorder %s140_s0, %s56_s10  ;;  %s15_s7 = int_to_ptr.vmem [resolvable:$true] %s14_s7 }
   0x3   :  { %p60_p1 = scmp.lt.u32.totalorder %s56_s10, %s140_s0 }
   0x5   :  { %p62_p2 = pnand %p60_p1, %p57_p0 }
   0x7   :  { %65 = shalt.err (!%p62_p2)
}
   0x8   :  { %s66_s15 = scalar_lea.vmem %s15_s7, 128  ;;  %p71_p4 = scmp.lt.s32.totalorder %s15_s7, %s15_s7 }
   0x9   :  { %p67_p3 = scmp.ne.s32.totalorder %s15_s7, %s66_s15  ;;  %p72_p5 = scmp.lt.s32.totalorder %s66_s15, %s66_s15 }
   0xb   :  { %p73_p6 = por %p72_p5, %p71_p4 }
   0xd   :  { %p74_p7 = pnand %p73_p6, %p67_p3 }
   0xf   :  { %77 = shalt.err (!%p74_p7)
}
  0x10   :  { %17 = dma.hbm_to_vmem [thread:$0]  %s140_s0, 128, %s15_s7, [#allocation3]  }
  0x11   :  { %100 = dma.done.wait [#allocation3], 128  }
  0x12   :  { %101 = vsyncadd [#allocation3], 4294967168  ;;  %v21_v0 = vld [vmem:[#allocation2] sm:$0xff]  ;;  %s105_s18 = smov [#allocation5]  }
  0x13   :  { %v22_v1 = vmul.f32 1.442695, %v21_v0  ;;  %s41_s19 = sshll.u32 %s105_s18, 4  ;;  %s42_s19 = int_to_ptr.vmem [resolvable:$true] %s41_s19 }
  0x14   :  { %s78_s0 = scalar_lea.vmem %s42_s19, 128  ;;  %p83_p9 = scmp.lt.s32.totalorder %s42_s19, %s42_s19 }
  0x15   :  { %52 = vpow2.f32 %v22_v1  ;;  %p79_p8 = scmp.ne.s32.totalorder %s42_s19, %s78_s0  ;;  %p84_p10 = scmp.lt.s32.totalorder %s78_s0, %s78_s0 }
  0x17   :  { %p85_p11 = por %p84_p10, %p83_p9 }
  0x19   :  { %p86_p12 = pnand %p85_p11, %p79_p8 }
  0x1f   :  { %v53_v2 = vpop.eup %52 }
  0x20   :  { %24 = vadd.xlane.f32.xlu0 %v53_v2 }
  0xad   :  { %v25_v3 = vpop.xlane.xlu0 %24 }
  0xae   :  { %v26_v4 = vrot.slane %v25_v3, 4 }
  0xb0   :  { %v27_v5 = vadd.f32 %v26_v4, %v25_v3 }
  0xb2   :  { %v28_v6 = vrot.slane %v27_v5, 2 }
  0xb4   :  { %v29_v7 = vadd.f32 %v28_v6, %v27_v5 }
  0xb6   :  { %v30_v8 = vrot.slane %v29_v7, 1 }
  0xb8   :  { %v31_v9 = vadd.f32 %v30_v8, %v29_v7 }
  0xba   :  { %54 = vrcp.f32 %v31_v9 }
  0xc4   :  { %v55_v10 = vpop.eup %54 }
  0xc5   :  { %v33_v11 = vmul.f32 %v55_v10, %v53_v2 }
  0xc7   :  { %34 = vst [vmem:[#allocation5] sm:$0xff] %v33_v11 }
  0xc8   :  { %89 = shalt.err (!%p86_p12)
}
  0xc9   :  { %s90_s22 = scalar_lea.hbm %s141_s1, 128 }
  0xca   :  { %p91_p13 = scmp.ne.s32.totalorder %s141_s1, %s90_s22  ;;  %p94_p0 = scmp.lt.u32.totalorder %s90_s22, %s141_s1 }
  0xcc   :  { %p96_p1 = pnand %p94_p0, %p91_p13 }
  0xce   :  { %99 = shalt.err (!%p96_p1)
}
  0xcf   :  { %44 = dma.vmem_to_hbm [thread:$0]  %s42_s19, 128, %s141_s1, [#allocation4]  }
  0xd0   :  { %102 = dma.done.wait [#allocation4], 128  }
  0xd1   :  { %103 = vsyncadd [#allocation4], 4294967168 }
  0xd2   :  { %48 = vsyncpa [#allocation3], 1 }
  0xd3   :  { %49 = vsyncpa [#allocation4], 1 }

</bundles_post_ra>
